<compile_context>
chip_gen: v5e
topology: v5e:2x2
jax: 0.10.0
libtpu: 0.0.40
codegen_flags: <defaults>
</compile_context>

<pallas_src>
import jax
import jax.numpy as jnp
from jax.experimental import pallas as pl
from jax.experimental.pallas import tpu as pltpu

LANE = 128


def _round_up(a, b):
    return (a + b - 1) // b * b


def _use_aggregate_first(f_in, f_out):
    # Aggregate-first (A@X then @W) when X is the narrower operand, unless the
    # streamed width would stay < 256 while F_out >= 256 (then transform-first
    # feeds the 2x256^2 MXU of v6e/v7x with a wider result).
    return (f_in <= f_out) and (f_out < 256 or f_in >= 256)


def _padded_num_nodes(n):
    n_p0 = _round_up(max(n, 1), LANE)
    # Pad to a 512 multiple so >=512-wide tiles divide evenly (bounded padding
    # waste, tiles at the measured HBM-roofline knee).
    return n_p0 if n_p0 <= 512 else _round_up(n_p0, 512)


def _vmem_limit_bytes():
    # Per-generation VMEM budget: ~3/4 of physical (v7x 64 MiB -> 48 MiB,
    # v5e/v6e 128 MiB -> 96 MiB), conservative fallback if the query fails.
    try:
        cap = pltpu.get_tpu_info().vmem_capacity_bytes
    except Exception:
        cap = 64 * 1024 * 1024
    return int(min(cap * 3 // 4, 112 * 1024 * 1024))


def _make_gnn_kernel(apply_w: bool, z_resident: bool, tk: int):
    """Fused aggregate / transform / ReLU / mean-pool kernel.

    apply_w=True : acc = sum_k A_ik @ X_k ; h = relu(bf16(acc) @ W_bf16 + b)
    apply_w=False: acc = sum_k A_ik @ (XW)_k ; h = relu(acc + b)
    The row tile's pooled contribution P_i @ h is written to the per-tile
    output slab at the last contraction step (out block index is constant over
    k, so Pallas writes it back only when the row tile advances).
    """

    def kernel(*refs):
        if apply_w:
            a_ref, z_ref, w_ref, b_ref, p_ref, out_ref, acc_ref = refs
        else:
            a_ref, z_ref, b_ref, p_ref, out_ref, acc_ref = refs
            w_ref = None

        k = pl.program_id(1)

        @pl.when(k == 0)
        def _init():
            acc_ref[...] = jnp.zeros_like(acc_ref)

        if z_resident:
            # Z lives fully in VMEM (constant block index => fetched once);
            # slice the current contraction window out of it.
            start = pl.multiple_of(k * tk, tk)
            z_tile = z_ref[pl.ds(start, tk), :]
        else:
            z_tile = z_ref[...]

        # bf16 x bf16 -> f32 accumulate on the MXU.
        acc_ref[...] += jnp.dot(a_ref[...], z_tile,
                                preferred_element_type=jnp.float32)

        @pl.when(k == pl.num_programs(1) - 1)
        def _finalize():
            acc = acc_ref[...]
            if apply_w:
                # bf16 epilogue matmul (single-pass MXU); f32 accumulation.
                h = jnp.dot(acc.astype(jnp.bfloat16), w_ref[...],
                            preferred_element_type=jnp.float32)
            else:
                h = acc
            h = jnp.maximum(h + b_ref[...], 0.0)     # f32 bias + ReLU
            # Fold mean pooling into this row tile: P[:, tile] @ h_tile.
            # Tiny B-row matmul -> keep f32 for accuracy.
            out_ref[0] = jnp.dot(
                p_ref[...], h, preferred_element_type=jnp.float32
            ).astype(out_ref.dtype)

    return kernel


def gnn_forward_pallas(a_norm_p, x, w, b, pool_p):
    """out[B, F_out] = pool @ relu(A_norm @ x @ w + b), fused Pallas kernel.

    a_norm_p : (n_p, n_p) bf16 GCN-normalized adjacency, zero-padded.
    pool_p   : (B, n_p)  f32 mean-pool matrix, zero-padded.
    """
    n_p = a_norm_p.shape[0]
    n, f_in = x.shape
    f_out = w.shape[1]
    n_graphs = pool_p.shape[0]

    apply_w = _use_aggregate_first(f_in, f_out)
    if apply_w:
        z, fz = x, f_in                                   # stream A @ X
    else:
        # tiny glue matmul; the kernel streams A @ (XW)
        z = jnp.dot(x, w, precision=jax.lax.Precision.HIGHEST)
        fz = f_out

    fz_p = _round_up(max(fz, 1), LANE)
    fin_p = _round_up(max(f_in, 1), LANE)
    fout_p = _round_up(max(f_out, 1), LANE)

    # ---- tile selection -----------------------------------------------------
    # Large tiles (HBM-roofline knee is ~512); n_p was padded so they divide.
    tk = max(t for t in (2048, 1024, 512, 256, 128) if t <= n_p and n_p % t == 0)
    tm = max(t for t in (1024, 512, 256, 128) if t <= n_p and n_p % t == 0)
    # v7x megacore: keep >= 2 row tiles on the "parallel" axis when possible.
    while tm > LANE and n_p // tm < 2:
        tm //= 2

    vmem_limit = _vmem_limit_bytes()
    # Keep Z fully VMEM-resident whenever it is small (it almost always is:
    # n_p * 128 * 2 bytes); otherwise fall back to streaming it per-k.
    z_resident = (n_p * fz_p * 2) <= (8 << 20)

    def _vmem_estimate(tm_, tk_):
        a_bytes = 2 * tm_ * tk_ * 2                              # double-buffered bf16
        z_bytes = 2 * (n_p if z_resident else tk_) * fz_p * 2
        acc_bytes = tm_ * fz_p * 4
        w_bytes = 2 * fin_p * fout_p * 2 if apply_w else 0
        small = 2 * (fout_p * 4 + n_graphs * tm_ * 4 + n_graphs * fout_p * 4)
        return a_bytes + z_bytes + acc_bytes + w_bytes + small

    # Shrink tiles if the estimate exceeds the per-generation budget (keeps the
    # same config working on v7x's 64 MiB and v5e/v6e's 128 MiB).
    while _vmem_estimate(tm, tk) > vmem_limit * 4 // 5 and (tm > LANE or tk > LANE):
        if tk >= tm and tk > LANE:
            tk //= 2
        elif tm > LANE:
            tm //= 2
        else:
            break

    ni, nk = n_p // tm, n_p // tk

    # Big streamed operands in bf16; bias / pool stay f32.
    z_p = jnp.zeros((n_p, fz_p), jnp.bfloat16).at[:n, :fz].set(
        z.astype(jnp.bfloat16))
    b_p = jnp.zeros((1, fout_p), jnp.float32).at[:, :f_out].set(
        b.reshape(1, -1).astype(jnp.float32))

    in_specs = [pl.BlockSpec((tm, tk), lambda i, k: (i, k))]       # A tile
    if z_resident:
        # Full-array block, constant index => fetched from HBM exactly once.
        in_specs.append(pl.BlockSpec((n_p, fz_p), lambda i, k: (0, 0)))
    else:
        in_specs.append(pl.BlockSpec((tk, fz_p), lambda i, k: (k, 0)))
    operands = [a_norm_p, z_p]

    if apply_w:
        w_p = jnp.zeros((fin_p, fout_p), jnp.bfloat16).at[:f_in, :f_out].set(
            w.astype(jnp.bfloat16))
        in_specs.append(pl.BlockSpec((fin_p, fout_p), lambda i, k: (0, 0)))
        operands.append(w_p)

    in_specs += [
        pl.BlockSpec((1, fout_p), lambda i, k: (0, 0)),            # bias
        pl.BlockSpec((n_graphs, tm), lambda i, k: (0, i)),         # pool columns
    ]
    operands += [b_p, pool_p]

    # NOTE: if the A-tile DMA is ever exposed at k-boundaries with these larger
    # tiles, bump its BlockSpec to pipeline_mode=pl.Buffered(3).
    partials = pl.pallas_call(
        _make_gnn_kernel(apply_w, z_resident, tk),
        out_shape=jax.ShapeDtypeStruct((ni, n_graphs, fout_p), jnp.float32),
        grid_spec=pltpu.PrefetchScalarGridSpec(
            num_scalar_prefetch=0,
            grid=(ni, nk),
            in_specs=in_specs,
            out_specs=pl.BlockSpec((1, n_graphs, fout_p), lambda i, k: (i, 0, 0)),
            scratch_shapes=[pltpu.VMEM((tm, fz_p), jnp.float32)],
        ),
        compiler_params=pltpu.CompilerParams(
            dimension_semantics=("parallel", "arbitrary"),
            vmem_limit_bytes=vmem_limit,
        ),
    )(*operands)

    # Sum the per-row-tile pooled contributions and strip lane padding.
    return jnp.sum(partials, axis=0)[:, :f_out]


def build_normalized_adjacency_padded(edge_index, num_nodes, num_nodes_padded,
                                      out_dtype=jnp.bfloat16):
    """Dense GCN-normalized adjacency D^-1/2 (A+I) D^-1/2 written directly into
    the zero-padded (n_p, n_p) buffer in the kernel's dtype (single N^2
    materialization — no separate f32 array + padded bf16 copy).

    Duplicate edges are summed (PyG message-sum semantics); self-loops are only
    added where missing (add_remaining_self_loops behaviour). Padded rows/cols
    stay exactly zero.
    """
    src, dst = edge_index[0], edge_index[1]
    a = jnp.zeros((num_nodes_padded, num_nodes_padded), jnp.float32)
    a = a.at[dst, src].add(1.0)                      # message flows src -> dst
    node_mask = jnp.arange(num_nodes_padded) < num_nodes
    diag = jnp.diagonal(a)
    a = a + jnp.diag(jnp.where(node_mask & (diag == 0), 1.0, 0.0))
    deg = jnp.sum(a, axis=1)
    d_inv_sqrt = jnp.where(deg > 0, jax.lax.rsqrt(deg), 0.0)
    return (d_inv_sqrt[:, None] * a * d_inv_sqrt[None, :]).astype(out_dtype)


def build_mean_pool_matrix_padded(batch, num_graphs, num_nodes_padded):
    """P[b, n] = 1/|graph b| if batch[n] == b else 0; padded columns are 0."""
    n = batch.shape[0]
    batch_p = jnp.pad(batch, (0, num_nodes_padded - n), constant_values=-1)
    one_hot = (batch_p[None, :] == jnp.arange(num_graphs)[:, None]).astype(jnp.float32)
    counts = jnp.sum(one_hot, axis=1, keepdims=True)
    return one_hot / jnp.maximum(counts, 1.0)


def model_wrapper_forward(x, edge_index, batch, w, b, num_graphs):
    n = x.shape[0]
    n_p = _padded_num_nodes(n)
    a_norm_p = build_normalized_adjacency_padded(edge_index, n, n_p)
    pool_p = build_mean_pool_matrix_padded(batch, num_graphs, n_p)
    return gnn_forward_pallas(a_norm_p, x, w, b, pool_p)


def reference_forward(x, edge_index, batch, w, b, num_graphs):
    """Pure-JAX reference mirroring the kernel's numerics (bf16 operands on the
    big matmuls, f32 accumulation, f32 pooling) for both matmul orders."""
    n, f_in = x.shape
    f_out = w.shape[1]
    a_bf = build_normalized_adjacency_padded(edge_index, n, n)       # (n, n) bf16
    pool = build_mean_pool_matrix_padded(batch, num_graphs, n)
    if _use_aggregate_first(f_in, f_out):
        agg = jnp.dot(a_bf, x.astype(jnp.bfloat16),
                      preferred_element_type=jnp.float32)
        h = jnp.dot(agg.astype(jnp.bfloat16), w.astype(jnp.bfloat16),
                    preferred_element_type=jnp.float32) + b[None, :]
    else:
        z = jnp.dot(x, w, precision=jax.lax.Precision.HIGHEST).astype(jnp.bfloat16)
        h = jnp.dot(a_bf, z, preferred_element_type=jnp.float32) + b[None, :]
    h = jnp.maximum(h, 0.0)
    return jnp.dot(pool, h, precision=jax.lax.Precision.HIGHEST)


if __name__ == "__main__":
    root = jax.random.PRNGKey(0)

    def run_case(name, n, e, n_graphs, f_in, f_out, key):
        k_x, k_e, k_w, k_b, k_g = jax.random.split(key, 5)
        x = jax.random.normal(k_x, (n, f_in), dtype=jnp.float32)
        edge_index = jax.random.randint(k_e, (2, e), 0, n, dtype=jnp.int32)
        batch = jnp.sort(jax.random.randint(k_g, (n,), 0, n_graphs, dtype=jnp.int32))
        w = jax.random.normal(k_w, (f_in, f_out), jnp.float32) * (1.0 / jnp.sqrt(f_in))
        b = jax.random.normal(k_b, (f_out,), jnp.float32) * 0.01

        out = model_wrapper_forward(x, edge_index, batch, w, b, n_graphs)
        out = jax.block_until_ready(out)
        ref = reference_forward(x, edge_index, batch, w, b, n_graphs)
        assert out.shape == (n_graphs, f_out), name
        assert jnp.allclose(out, ref, atol=5e-3, rtol=5e-3), name

    keys = jax.random.split(root, 3)
    # 1) aggregate-first path (F_in <= F_out), single tile.
    run_case("aggregate_first", n=32, e=64, n_graphs=2, f_in=16, f_out=32, key=keys[0])
    # 2) transform-first path (F_in > F_out) — previously untested branch.
    run_case("transform_first", n=40, e=96, n_graphs=2, f_in=64, f_out=32, key=keys[1])
    # 3) multi-tile grid: padded N=1536 -> grid (3, 3), resident-Z k-slicing,
    #    >= 2 row tiles on the parallel axis (both v7x TensorCores busy).
    run_case("multi_tile", n=1500, e=6000, n_graphs=3, f_in=32, f_out=64, key=keys[2])

    print("KERNEL_OK")
</pallas_src>

<mosaic_0001>
module attributes {stable_mosaic.version = 11 : i64} {
  func.func @kernel(%arg0: i32, %arg1: i32, %arg2: memref<128x128xbf16, #tpu.memory_space<vmem>>, %arg3: memref<128x128xbf16, #tpu.memory_space<vmem>>, %arg4: memref<128x128xbf16, #tpu.memory_space<vmem>>, %arg5: memref<1x128xf32, #tpu.memory_space<vmem>>, %arg6: memref<2x128xf32, #tpu.memory_space<vmem>>, %arg7: memref<1x2x128xf32, #tpu.memory_space<vmem>>, %arg8: memref<128x128xf32, #tpu.memory_space<vmem>>) attributes {dimension_semantics = [#tpu.dimension_semantics<parallel>, #tpu.dimension_semantics<arbitrary>], iteration_bounds = array<i64: 1, 1>, scalar_prefetch = 0 : i64, scratch_operands = 1 : i64, tpu.core_type = #tpu.core_type<tc>, window_params = [{transform_indices = @transform_0, window_bounds = array<i64: 128, 128>}, {pipeline_mode = #tpu.pipeline_mode<synchronous>, transform_indices = @transform_1, window_bounds = array<i64: 128, 128>}, {pipeline_mode = #tpu.pipeline_mode<synchronous>, transform_indices = @transform_2, window_bounds = array<i64: 128, 128>}, {pipeline_mode = #tpu.pipeline_mode<synchronous>, transform_indices = @transform_3, window_bounds = array<i64: 1, 128>}, {transform_indices = @transform_4, window_bounds = array<i64: 2, 128>}, {transform_indices = @transform_5, window_bounds = array<i64: 1, 2, 128>}]} {
    %c0_i32 = arith.constant 0 : i32
    %0 = arith.cmpi eq, %arg1, %c0_i32 : i32
    %1 = arith.extui %0 : i1 to i32
    %c0_i32_0 = arith.constant 0 : i32
    %2 = arith.cmpi ne, %1, %c0_i32_0 : i32
    scf.if %2 {
      %cst_9 = arith.constant 0.000000e+00 : f32
      %15 = vector.broadcast %cst_9 : f32 to vector<128x128xf32>
      %c0_10 = arith.constant 0 : index
      %c0_11 = arith.constant 0 : index
      %16 = vector.load %arg8[%c0_10, %c0_11] : memref<128x128xf32, #tpu.memory_space<vmem>>, vector<128x128xf32>
      tpu.vector_store %arg8[%c0_10, %c0_11], %15 {strides = array<i32>} : memref<128x128xf32, #tpu.memory_space<vmem>>, vector<128x128xf32>,
    } else {
    }
    %c128_i32 = arith.constant 128 : i32
    %3 = arith.muli %arg1, %c128_i32 : i32
    %4 = tpu.assume_multiple %3, 128 : i32
    %5 = arith.index_cast %4 : i32 to index
    %c0 = arith.constant 0 : index
    %6 = vector.load %arg3[%5, %c0] : memref<128x128xbf16, #tpu.memory_space<vmem>>, vector<128x128xbf16>
    %c0_1 = arith.constant 0 : index
    %c0_2 = arith.constant 0 : index
    %7 = vector.load %arg8[%c0_1, %c0_2] : memref<128x128xf32, #tpu.memory_space<vmem>>, vector<128x128xf32>
    %c0_3 = arith.constant 0 : index
    %c0_4 = arith.constant 0 : index
    %8 = vector.load %arg2[%c0_3, %c0_4] : memref<128x128xbf16, #tpu.memory_space<vmem>>, vector<128x128xbf16>
    %cst = arith.constant dense<0.000000e+00> : vector<128x128xf32>
    %9 = tpu.matmul %8, %6, %cst {dimension_numbers = #tpu.dot_dimension_numbers<[1], [0], [0], [1], [0, 0, 1, 1], [], []>} : vector<128x128xbf16>, vector<128x128xbf16>, vector<128x128xf32> -> vector<128x128xf32>
    %10 = arith.addf %7, %9 : vector<128x128xf32>
    %c0_5 = arith.constant 0 : index
    %c0_6 = arith.constant 0 : index
    %11 = vector.load %arg8[%c0_5, %c0_6] : memref<128x128xf32, #tpu.memory_space<vmem>>, vector<128x128xf32>
    tpu.vector_store %arg8[%c0_5, %c0_6], %10 {strides = array<i32>} : memref<128x128xf32, #tpu.memory_space<vmem>>, vector<128x128xf32>,
    %c0_i32_7 = arith.constant 0 : i32
    %12 = arith.cmpi eq, %arg1, %c0_i32_7 : i32
    %13 = arith.extui %12 : i1 to i32
    %c0_i32_8 = arith.constant 0 : i32
    %14 = arith.cmpi ne, %13, %c0_i32_8 : i32
    scf.if %14 {
      %c0_9 = arith.constant 0 : index
      %c0_10 = arith.constant 0 : index
      %15 = vector.load %arg8[%c0_9, %c0_10] : memref<128x128xf32, #tpu.memory_space<vmem>>, vector<128x128xf32>
      %16 = arith.truncf %15 : vector<128x128xf32> to vector<128x128xbf16>
      %c0_11 = arith.constant 0 : index
      %c0_12 = arith.constant 0 : index
      %17 = vector.load %arg4[%c0_11, %c0_12] : memref<128x128xbf16, #tpu.memory_space<vmem>>, vector<128x128xbf16>
      %cst_13 = arith.constant dense<0.000000e+00> : vector<128x128xf32>
      %18 = tpu.matmul %16, %17, %cst_13 {dimension_numbers = #tpu.dot_dimension_numbers<[1], [0], [0], [1], [0, 0, 1, 1], [], []>} : vector<128x128xbf16>, vector<128x128xbf16>, vector<128x128xf32> -> vector<128x128xf32>
      %c0_14 = arith.constant 0 : index
      %c0_15 = arith.constant 0 : index
      %19 = vector.load %arg5[%c0_14, %c0_15] : memref<1x128xf32, #tpu.memory_space<vmem>>, vector<1x128xf32>
      %20 = vector.broadcast %19 : vector<1x128xf32> to vector<128x128xf32>
      %21 = arith.addf %18, %20 : vector<128x128xf32>
      %cst_16 = arith.constant 0.000000e+00 : f32
      %22 = vector.broadcast %cst_16 : f32 to vector<128x128xf32>
      %23 = arith.maximumf %21, %22 : vector<128x128xf32>
      %c0_17 = arith.constant 0 : index
      %c0_18 = arith.constant 0 : index
      %24 = vector.load %arg6[%c0_17, %c0_18] : memref<2x128xf32, #tpu.memory_space<vmem>>, vector<2x128xf32>
      %cst_19 = arith.constant dense<0.000000e+00> : vector<2x128xf32>
      %25 = tpu.matmul %24, %23, %cst_19 {dimension_numbers = #tpu.dot_dimension_numbers<[1], [0], [0], [1], [0, 0, 1, 1], [], []>} : vector<2x128xf32>, vector<128x128xf32>, vector<2x128xf32> -> vector<2x128xf32>
      %c0_20 = arith.constant 0 : index
      %c0_21 = arith.constant 0 : index
      %c0_22 = arith.constant 0 : index
      %26 = vector.load %arg7[%c0_20, %c0_21, %c0_22] : memref<1x2x128xf32, #tpu.memory_space<vmem>>, vector<1x2x128xf32>
      %27 = vector.shape_cast %26 : vector<1x2x128xf32> to vector<2x128xf32>
      %28 = vector.shape_cast %25 : vector<2x128xf32> to vector<1x2x128xf32>
      tpu.vector_store %arg7[%c0_20, %c0_21, %c0_22], %28 {strides = array<i32>} : memref<1x2x128xf32, #tpu.memory_space<vmem>>, vector<1x2x128xf32>,
    } else {
    }
    return
  }
  func.func @transform_0(%arg0: i32, %arg1: i32) -> (i32, i32) {
    %c0_i32 = arith.constant 0 : i32
    return %arg0, %arg1 : i32, i32
  }
  func.func @transform_1(%arg0: i32, %arg1: i32) -> (i32, i32) {
    %c0_i32 = arith.constant 0 : i32
    %c0_i32_0 = arith.constant 0 : i32
    %c0_i32_1 = arith.constant 0 : i32
    return %c0_i32, %c0_i32_0 : i32, i32
  }
  func.func @transform_2(%arg0: i32, %arg1: i32) -> (i32, i32) {
    %c0_i32 = arith.constant 0 : i32
    %c0_i32_0 = arith.constant 0 : i32
    %c0_i32_1 = arith.constant 0 : i32
    return %c0_i32, %c0_i32_0 : i32, i32
  }
  func.func @transform_3(%arg0: i32, %arg1: i32) -> (i32, i32) {
    %c0_i32 = arith.constant 0 : i32
    %c0_i32_0 = arith.constant 0 : i32
    %c0_i32_1 = arith.constant 0 : i32
    return %c0_i32, %c0_i32_0 : i32, i32
  }
  func.func @transform_4(%arg0: i32, %arg1: i32) -> (i32, i32) {
    %c0_i32 = arith.constant 0 : i32
    %c0_i32_0 = arith.constant 0 : i32
    return %c0_i32, %arg0 : i32, i32
  }
  func.func @transform_5(%arg0: i32, %arg1: i32) -> (i32, i32, i32) {
    %c0_i32 = arith.constant 0 : i32
    %c0_i32_0 = arith.constant 0 : i32
    %c0_i32_1 = arith.constant 0 : i32
    return %arg0, %c0_i32, %c0_i32_0 : i32, i32, i32
  }
}

</mosaic_0001>

<bundles_post_ra>
// kernel: tpu_custom_call.1
= control target key start
LH: loop header
LB: loop body
LE: loop exit
PB: predicated region body
PF: predicated region fallthrough
CT: control target
= control target key end

     0   :  { %10 = vsyncpa [#allocation4], 0  ;;  %s819_s0 = inlined_call_operand.hbm [shape: bf16[128,128], index: 0, kind: input, shape index: {}]   ;;  %s820_s1 = inlined_call_operand.hbm [shape: bf16[128,128], index: 1, kind: input, shape index: {}]   ;;  %s821_s2 = inlined_call_operand.hbm [shape: bf16[128,128], index: 2, kind: input, shape index: {}]   ;;  %s822_s3 = inlined_call_operand.vmem [shape: f32[1,128], index: 3, kind: input, shape index: {}]   ;;  %s823_s4 = inlined_call_operand.vmem [shape: f32[2,128], index: 4, kind: input, shape index: {}]   ;;  %s824_s5 = inlined_call_operand.hbm [shape: f32[1,2,128], index: 5, kind: output, shape index: {}]  }
   0x1   :  { %11 = vsyncpa [#allocation7], 0 }
   0x2   :  { %12 = vsyncpa [#allocation5], 0  ;;  %s30_s20 = sshll.u32 %s820_s1, 4  ;;  %s765_s21 = smov [#allocation6]   ;;  %s31_s20 = int_to_ptr.hbm [resolvable:$true] %s30_s20 }
   0x3   :  { %s32_s22 = sshll.u32 %s765_s21, 4  ;;  %s17_s25 = sshll.u32 %s819_s0, 4  ;;  %s33_s22 = int_to_ptr.vmem [resolvable:$true] %s32_s22  ;;  %s18_s25 = int_to_ptr.hbm [resolvable:$true] %s17_s25 }
   0x4   :  { %s766_s26 = smov 64   ;;  %s767_s27 = smov 4  }
   0x5   :  { %38 = dma.hbm_to_vmem [thread:$0]  %s31_s20, 1024, %s33_s22, [#allocation7], %s766_s26, %s766_s26, %s767_s27  }
   0x6   :  { %s768_s28 = smov [#allocation3]   ;;  %s43_s7 = sshll.u32 %s821_s2, 4  ;;  %s44_s7 = int_to_ptr.hbm [resolvable:$true] %s43_s7 }
   0x7   :  { %s19_s29 = sshll.u32 %s768_s28, 4  ;;  %s769_s1 = smov [#allocation8]   ;;  %s20_s29 = int_to_ptr.vmem [resolvable:$true] %s19_s29 }
   0x8   :  { %25 = dma.hbm_to_vmem [thread:$0]  %s18_s25, 1024, %s20_s29, [#allocation4], %s766_s26, %s766_s26, %s767_s27  }
   0x9   :  { %s45_s8 = sshll.u32 %s769_s1, 4  ;;  %s46_s8 = int_to_ptr.vmem [resolvable:$true] %s45_s8 }
   0xa   :  { %51 = dma.hbm_to_vmem [thread:$0]  %s44_s7, 1024, %s46_s8, [#allocation7], %s766_s26, %s766_s26, %s767_s27  }
   0xb   :  { %759 = dma.done.wait [#allocation4], 1024  }
   0xc   :  { %760 = vsyncadd [#allocation4], 4294966272 }
   0xd   :  { %761 = dma.done.wait [#allocation7], 2048  }
   0xe   :  { %762 = vsyncadd [#allocation7], 4294965248  ;;  %v623_v0 = vld [vmem:[#allocation6 + $0x38] sm:$0xff]  ;;  %v622_v1 = vld [vmem:[#allocation6 + $0x30] sm:$0xff]  ;;  %s770_s10 = smov [#allocation9]   ;;  %s507_s14 = sshll.u32 %s824_s5, 4  ;;  %s508_s14 = int_to_ptr.hbm [resolvable:$true] %s507_s14 }
   0xf   :  { %237 = vmatpush.bf16.msra.mxu0 %v623_v0  ;;  %640 = vmatpush.bf16.msra.mxu3 %v623_v0  ;;  %v621_v2 = vld [vmem:[#allocation6 + $0x28] sm:$0xff]  ;;  %v620_v3 = vld [vmem:[#allocation6 + $0x20] sm:$0xff]  ;;  %v619_v4 = vld [vmem:[#allocation6 + $0x18] sm:$0xff]  ;;  %s505_s11 = sshll.u32 %s770_s10, 4  ;;  %s506_s11 = int_to_ptr.vmem [resolvable:$true] %s505_s11 }
  0x10   :  { %v618_v5 = vld [vmem:[#allocation6 + $0x10] sm:$0xff]  ;;  %v617_v6 = vld [vmem:[#allocation6 + $0x8] sm:$0xff]  ;;  %v616_v7 = vld [vmem:[#allocation6] sm:$0xff] }
  0x11   :  { %v624_v8 = vld [vmem:[#allocation3] sm:$0xff]  ;;  %v629_v9 = vld [vmem:[#allocation3 + $0x28] sm:$0xff]  ;;  %v630_v11 = vld [vmem:[#allocation3 + $0x30] sm:$0xff] }
  0x12   :  { %v625_v10 = vld [vmem:[#allocation3 + $0x8] sm:$0xff]  ;;  %v626_v12 = vld [vmem:[#allocation3 + $0x10] sm:$0xff]  ;;  %v631_v13 = vld [vmem:[#allocation3 + $0x38] sm:$0xff] }
  0x13   :  { %238 = vmatpush.bf16.msra.mxu0 %v622_v1  ;;  %641 = vmatpush.bf16.msra.mxu3 %v622_v1  ;;  %v639_v14 = vld [vmem:[#allocation8 + $0x38] sm:$0xff]  ;;  %v638_v15 = vld [vmem:[#allocation8 + $0x30] sm:$0xff]  ;;  %v637_v16 = vld [vmem:[#allocation8 + $0x28] sm:$0xff] }
  0x14   :  { %413 = vmatpush.bf16.msra.mxu1 %v639_v14  ;;  %648 = vmatpush.bf16.msra.mxu2 %v639_v14  ;;  %v636_v17 = vld [vmem:[#allocation8 + $0x20] sm:$0xff]  ;;  %v627_v18 = vld [vmem:[#allocation3 + $0x18] sm:$0xff]  ;;  %v634_v21 = vld [vmem:[#allocation8 + $0x10] sm:$0xff] }
  0x15   :  { %v635_v19 = vld [vmem:[#allocation8 + $0x18] sm:$0xff]  ;;  %v628_v20 = vld [vmem:[#allocation3 + $0x20] sm:$0xff]  ;;  %v633_v22 = vld [vmem:[#allocation8 + $0x8] sm:$0xff] }
  0x16   :  { %v632_v23 = vld [vmem:[#allocation8] sm:$0xff] }
  0x17   :  { %239 = vmatpush.bf16.msra.mxu0 %v621_v2  ;;  %642 = vmatpush.bf16.msra.mxu3 %v621_v2  ;;  %v662_v60 = vld [vmem:[%s822_s3] ss:$0 sm:$0xff] }
  0x18   :  { %414 = vmatpush.bf16.msra.mxu1 %v638_v15  ;;  %649 = vmatpush.bf16.msra.mxu2 %v638_v15 }
  0x1b   :  { %240 = vmatpush.bf16.msra.mxu0 %v620_v3  ;;  %643 = vmatpush.bf16.msra.mxu3 %v620_v3 }
  0x1c   :  { %415 = vmatpush.bf16.msra.mxu1 %v637_v16  ;;  %650 = vmatpush.bf16.msra.mxu2 %v637_v16 }
  0x1f   :  { %241 = vmatpush.bf16.msra.mxu0 %v619_v4  ;;  %644 = vmatpush.bf16.msra.mxu3 %v619_v4 }
  0x20   :  { %416 = vmatpush.bf16.msra.mxu1 %v636_v17  ;;  %651 = vmatpush.bf16.msra.mxu2 %v636_v17 }
  0x23   :  { %242 = vmatpush.bf16.msra.mxu0 %v618_v5  ;;  %645 = vmatpush.bf16.msra.mxu3 %v618_v5 }
  0x24   :  { %417 = vmatpush.bf16.msra.mxu1 %v635_v19  ;;  %652 = vmatpush.bf16.msra.mxu2 %v635_v19 }
  0x27   :  { %243 = vmatpush.bf16.msra.mxu0 %v617_v6  ;;  %646 = vmatpush.bf16.msra.mxu3 %v617_v6 }
  0x28   :  { %418 = vmatpush.bf16.msra.mxu1 %v634_v21  ;;  %653 = vmatpush.bf16.msra.mxu2 %v634_v21 }
  0x2b   :  { %244 = vmatpush.bf16.msra.mxu0 %v616_v7  ;;  %647 = vmatpush.bf16.msra.mxu3 %v616_v7 }
  0x2c   :  { %419 = vmatpush.bf16.msra.mxu1 %v633_v22  ;;  %654 = vmatpush.bf16.msra.mxu2 %v633_v22 }
  0x2e   :  { %245 = vmatmul.bf16.vlgmr.msra.gmra.mxu0 %v624_v8  ;;  %270 = vmatmul.bf16.vlgmr.msra.gmra.mxu3 %v629_v9 }
  0x30   :  { %420 = vmatpush.bf16.msra.mxu1 %v632_v23  ;;  %655 = vmatpush.bf16.msra.mxu2 %v632_v23 }
  0x3e   :  { %250 = vmatmul.bf16.gmra.mxu0 %v625_v10  ;;  %275 = vmatmul.bf16.gmra.mxu3 %v630_v11 }
  0x4e   :  { %255 = vmatmul.bf16.gmra.mxu0 %v626_v12  ;;  %280 = vmatmul.bf16.gmra.mxu3 %v631_v13 }
  0x5e   :  { %260 = vmatmul.bf16.gmra.mxu0 %v627_v18 }
  0x6e   :  { %265 = vmatmul.bf16.gmra.mxu0 %v628_v20 }
  0xab   :  { %v246_v24 = vpop.f32.mrf.mxu0 }
  0xb1   :  { %v271_v25 = vpop.f32.mrf.mxu3 }
  0xb3   :  { %v248_v26 = vpop.f32.mrf.mxu0 }
  0xb4   :  { %v337_v27 = vpack.c.bf16 %v248_v26, %v246_v24 }
  0xb6   :  { %421 = vmatmul.bf16.vlgmr.msra.gmra.mxu1 %v337_v27 }
  0xb9   :  { %v273_v28 = vpop.f32.mrf.mxu3 }
  0xba   :  { %v342_v29 = vpack.c.bf16 %v273_v28, %v271_v25 }
  0xbb   :  { %v251_v30 = vpop.f32.mrf.mxu0 }
  0xbc   :  { %446 = vmatmul.bf16.vlgmr.msra.gmra.mxu2 %v342_v29 }
  0xc1   :  { %v276_v31 = vpop.f32.mrf.mxu3 }
  0xc3   :  { %v253_v32 = vpop.f32.mrf.mxu0 }
  0xc4   :  { %v338_v33 = vpack.c.bf16 %v253_v32, %v251_v30 }
  0xc6   :  { %426 = vmatmul.bf16.gmra.mxu1 %v338_v33  ;;  %v478_v33 = vld [vmem:[%s823_s4] sm:$0x3] }
  0xc9   :  { %v278_v34 = vpop.f32.mrf.mxu3 }
  0xca   :  { %v343_v35 = vpack.c.bf16 %v278_v34, %v276_v31 }
  0xcb   :  { %v256_v36 = vpop.f32.mrf.mxu0 }
  0xcc   :  { %451 = vmatmul.bf16.gmra.mxu2 %v343_v35 }
  0xd1   :  { %v281_v37 = vpop.f32.mrf.mxu3 }
  0xd3   :  { %v258_v38 = vpop.f32.mrf.mxu0 }
  0xd4   :  { %v339_v39 = vpack.c.bf16 %v258_v38, %v256_v36 }
  0xd6   :  { %431 = vmatmul.bf16.gmra.mxu1 %v339_v39 }
  0xd9   :  { %v283_v40 = vpop.f32.mrf.mxu3 }
  0xda   :  { %v344_v41 = vpack.c.bf16 %v283_v40, %v281_v37 }
  0xdb   :  { %v261_v42 = vpop.f32.mrf.mxu0 }
  0xdc   :  { %456 = vmatmul.bf16.gmra.mxu2 %v344_v41 }
  0xe3   :  { %v263_v43 = vpop.f32.mrf.mxu0 }
  0xe4   :  { %v340_v44 = vpack.c.bf16 %v263_v43, %v261_v42 }
  0xe6   :  { %436 = vmatmul.bf16.gmra.mxu1 %v340_v44 }
  0xeb   :  { %v266_v45 = vpop.f32.mrf.mxu0 }
  0xf3   :  { %v268_v46 = vpop.f32.mrf.mxu0 }
  0xf4   :  { %v341_v47 = vpack.c.bf16 %v268_v46, %v266_v45 }
  0xf6   :  { %441 = vmatmul.bf16.gmra.mxu1 %v341_v47 }
 0x133   :  { %v422_v48 = vpop.f32.mrf.mxu1 }
 0x134   :  { %v423_v29 = vadd.f32 %v662_v60, %v422_v48 }
 0x136   :  { %v462_v32 = vmax.f32 %v423_v29, 0.0 }
 0x13b   :  { %v424_v49 = vpop.f32.mrf.mxu1 }
 0x13c   :  { %v425_v27 = vadd.f32 %v662_v60, %v424_v49 }
 0x13e   :  { %v463_v31 = vmax.f32 %v425_v27, 0.0 }
 0x13f   :  { %v447_v50 = vpop.f32.mrf.mxu2 }
 0x140   :  { %v448_v7 = vadd.f32 %v662_v60, %v447_v50 }
 0x142   :  { %v472_v11 = vmax.f32 %v448_v7, 0.0 }
 0x143   :  { %v427_v51 = vpop.f32.mrf.mxu1 }
 0x144   :  { %v428_v25 = vadd.f32 %v662_v60, %v427_v51 }
 0x146   :  { %v464_v30 = vmax.f32 %v428_v25, 0.0 }
 0x147   :  { %v449_v52 = vpop.f32.mrf.mxu2 }
 0x148   :  { %v450_v5 = vadd.f32 %v662_v60, %v449_v52 }
 0x14a   :  { %v473_v9 = vmax.f32 %v450_v5, 0.0 }
 0x14b   :  { %v429_v53 = vpop.f32.mrf.mxu1 }
 0x14c   :  { %v430_v23 = vadd.f32 %v662_v60, %v429_v53 }
 0x14e   :  { %v465_v28 = vmax.f32 %v430_v23, 0.0 }
 0x14f   :  { %v452_v54 = vpop.f32.mrf.mxu2 }
 0x150   :  { %v453_v3 = vadd.f32 %v662_v60, %v452_v54 }
 0x152   :  { %v474_v8 = vmax.f32 %v453_v3, 0.0 }
 0x153   :  { %v432_v55 = vpop.f32.mrf.mxu1 }
 0x154   :  { %v433_v21 = vadd.f32 %v662_v60, %v432_v55 }
 0x156   :  { %v466_v26 = vmax.f32 %v433_v21, 0.0 }
 0x157   :  { %v454_v56 = vpop.f32.mrf.mxu2 }
 0x158   :  { %v455_v0 = vadd.f32 %v662_v60, %v454_v56 }
 0x15a   :  { %v475_v6 = vmax.f32 %v455_v0, 0.0 }
 0x15b   :  { %v434_v57 = vpop.f32.mrf.mxu1 }
 0x15c   :  { %v435_v19 = vadd.f32 %v662_v60, %v434_v57 }
 0x15e   :  { %v467_v24 = vmax.f32 %v435_v19, 0.0 }
 0x15f   :  { %v457_v58 = vpop.f32.mrf.mxu2 }
 0x160   :  { %v458_v62 = vadd.f32 %v662_v60, %v457_v58 }
 0x162   :  { %v476_v4 = vmax.f32 %v458_v62, 0.0 }
 0x163   :  { %v437_v59 = vpop.f32.mrf.mxu1 }
 0x164   :  { %v438_v17 = vadd.f32 %v662_v60, %v437_v59 }
 0x166   :  { %v468_v22 = vmax.f32 %v438_v17, 0.0 }
 0x167   :  { %v459_v61 = vpop.f32.mrf.mxu2 }
 0x168   :  { %v460_v63 = vadd.f32 %v662_v60, %v459_v61 }
 0x16a   :  { %v477_v1 = vmax.f32 %v460_v63, 0.0 }
 0x16b   :  { %v439_v2 = vpop.f32.mrf.mxu1 }
 0x16c   :  { %479 = vmatpush.msrb.mxu2 %v477_v1  ;;  %v440_v15 = vadd.f32 %v662_v60, %v439_v2 }
 0x16e   :  { %480 = vmatpush.msrb.mxu2 %v476_v4  ;;  %v469_v20 = vmax.f32 %v440_v15, 0.0 }
 0x170   :  { %481 = vmatpush.msrb.mxu2 %v475_v6 }
 0x172   :  { %482 = vmatpush.msrb.mxu2 %v474_v8 }
 0x173   :  { %v442_v10 = vpop.f32.mrf.mxu1 }
 0x174   :  { %483 = vmatpush.msrb.mxu2 %v473_v9  ;;  %v443_v13 = vadd.f32 %v662_v60, %v442_v10 }
 0x176   :  { %484 = vmatpush.msrb.mxu2 %v472_v11  ;;  %v470_v18 = vmax.f32 %v443_v13, 0.0 }
 0x17b   :  { %v444_v12 = vpop.f32.mrf.mxu1 }
 0x17c   :  { %v445_v14 = vadd.f32 %v662_v60, %v444_v12 }
 0x17e   :  { %v471_v16 = vmax.f32 %v445_v14, 0.0 }
 0x180   :  { %485 = vmatpush.msrb.mxu2 %v471_v16 }
 0x182   :  { %486 = vmatpush.msrb.mxu2 %v470_v18 }
 0x184   :  { %487 = vmatpush.msrb.mxu2 %v469_v20 }
 0x186   :  { %488 = vmatpush.msrb.mxu2 %v468_v22 }
 0x188   :  { %489 = vmatpush.msrb.mxu2 %v467_v24 }
 0x18a   :  { %490 = vmatpush.msrb.mxu2 %v466_v26 }
 0x18c   :  { %491 = vmatpush.msrb.mxu2 %v465_v28 }
 0x18e   :  { %492 = vmatpush.msrb.mxu2 %v464_v30 }
 0x190   :  { %493 = vmatpush.msrb.mxu2 %v463_v31 }
 0x192   :  { %494 = vmatpush.msrb.mxu2 %v462_v32 }
 0x193   :  { %495 = vmatmul.f32.vlgmr.msrb.gmra.mxu2 %v478_v33 }
 0x216   :  { %v496_v34 = vpop.f32.mrf.mxu2 }
 0x217   :  { %499 = vst [vmem:[#allocation9] sm:$0x3] %v496_v34 }
 0x218   :  { %510 = dma.vmem_to_hbm [thread:$0]  %s506_s11, 32, %s508_s14, [#allocation5]  }
 0x219   :  { %763 = dma.done.wait [#allocation5], 32  }
 0x21a   :  { %764 = vsyncadd [#allocation5], 4294967264 }
 0x21b   :  { %515 = vsyncpa [#allocation4], 1 }
 0x21c   :  { %516 = vsyncpa [#allocation7], 1 }
 0x21d   :  { %517 = vsyncpa [#allocation5], 1 }

</bundles_post_ra>
